<compile_context>
chip_gen: v7x
topology: tpu7x:2x2x1
jax: 0.10.0
libtpu: 0.0.40
codegen_flags: <defaults>
</compile_context>

<pallas_src>
import math

import jax
import jax.numpy as jnp
from jax.experimental import pallas as pl
from jax.experimental.pallas import tpu as pltpu

_LANE = 128
# Conservative per-kernel tile budget (double-buffered streams) that fits the
# scoped-VMEM defaults across v5e/v6e (128 MiB phys) and v7x (64 MiB phys).
_VMEM_TILE_BUDGET = 24 * 1024 * 1024


# ----------------------------- kernels ------------------------------------ #

def _eval_kernel(gamma_ref, raw_ref, new_ref, out_ref):
    # out = raw + gamma * new   (dropout is identity in eval mode)
    out_ref[...] = raw_ref[...] + gamma_ref[...] * new_ref[...]


def _train_kernel(gamma_ref, raw_ref, new_ref, keep_ref, out_ref):
    # gamma already carries the inverted-dropout 1/(1-p) scale (folded in wrapper);
    # keep is a 0/1 mask in the compute dtype.
    out_ref[...] = raw_ref[...] + keep_ref[...] * (gamma_ref[...] * new_ref[...])


# ----------------------------- helpers ------------------------------------ #

def _sublane(dtype) -> int:
    # sublane packing for the dtype (f32: 8, bf16: 16, int8/fp8: 32)
    return {1: 32, 2: 16, 4: 8}.get(jnp.dtype(dtype).itemsize, 8)


def _choose_block_rows(rows: int, width: int, itemsize: int,
                       n_streams: int, sub: int) -> int:
    # budget = n_streams x 2 pipeline buffers x block_rows x width x itemsize
    per_row = n_streams * 2 * width * itemsize
    cap = max(sub, (_VMEM_TILE_BUDGET // per_row) // sub * sub)
    cap = min(cap, 2048)
    if rows <= cap:
        # single block whose shape equals the full array dims -> always legal,
        # regardless of sublane divisibility.
        return rows
    # multiple of the sublane pack; Pallas masks the ragged tail block.
    return cap


# ----------------------------- wrapper ------------------------------------ #

def layer_scale_block(raw_inputs, new_inputs, gamma, *,
                      dropout_p: float = 0.0, training: bool = False,
                      rng_key=None, keep_mask=None):
    assert raw_inputs.shape == new_inputs.shape
    assert 0.0 <= dropout_p < 1.0, "dropout_p must be in [0, 1)"
    D = raw_inputs.shape[-1]
    assert gamma.shape == (D,)

    orig_shape = raw_inputs.shape
    dtype = raw_inputs.dtype
    itemsize = jnp.dtype(dtype).itemsize
    total = raw_inputs.size

    use_dropout = training and dropout_p > 0.0
    gamma_eff = gamma.astype(dtype)
    if use_dropout:
        gamma_eff = gamma_eff * jnp.asarray(1.0 / (1.0 - dropout_p), dtype)

    # Lane-dense last axis: if D is not a multiple of 128 lanes, re-flatten so the
    # kernel sees width = lcm(D, 128); gamma tiles periodically along that axis.
    width = D
    if D % _LANE != 0:
        cand = math.lcm(D, _LANE)
        if total % cand == 0:
            width = cand
    rep = width // D
    rows = total // width

    raw2 = raw_inputs.reshape(rows, width)
    new2 = new_inputs.reshape(rows, width)
    gamma2 = (jnp.tile(gamma_eff, rep) if rep > 1 else gamma_eff).reshape(1, width)

    n_streams = 4 if use_dropout else 3  # raw, new, (keep), out
    sub = _sublane(dtype)
    block_rows = _choose_block_rows(rows, width, itemsize, n_streams, sub)
    grid = (pl.cdiv(rows, block_rows),)

    tile_spec = pl.BlockSpec((block_rows, width), lambda i: (i, 0))
    gamma_spec = pl.BlockSpec((1, width), lambda i: (0, 0))
    out_shape = jax.ShapeDtypeStruct((rows, width), dtype)

    vmem_bytes = n_streams * 2 * block_rows * width * itemsize + 2 * width * itemsize
    vmem_limit = int(min(max(vmem_bytes + (4 << 20), 16 << 20), 48 << 20))
    cparams = pltpu.CompilerParams(
        dimension_semantics=("parallel",),   # 1-D grid shards across TCs (v7x megacore)
        vmem_limit_bytes=vmem_limit,
    )

    if use_dropout:
        # TODO(synk): on real TPU hardware this keep-mask HBM stream could be avoided
        # with pltpu.prng_random_bits inside the kernel; it is generated host-side for
        # portability (the TPU hardware PRNG has no interpret/CPU lowering), and
        # PyTorch's dropout RNG stream cannot be bit-matched either way.
        if keep_mask is None:
            if rng_key is None:
                rng_key = jax.random.PRNGKey(0)
            keep2 = jax.random.bernoulli(rng_key, 1.0 - dropout_p,
                                         (rows, width)).astype(dtype)
        else:
            assert keep_mask.shape == orig_shape
            keep2 = keep_mask.astype(dtype).reshape(rows, width)

        out2 = pl.pallas_call(
            _train_kernel,
            out_shape=out_shape,
            grid=grid,
            in_specs=[gamma_spec, tile_spec, tile_spec, tile_spec],
            out_specs=tile_spec,
            compiler_params=cparams,
        )(gamma2, raw2, new2, keep2)
    else:
        out2 = pl.pallas_call(
            _eval_kernel,
            out_shape=out_shape,
            grid=grid,
            in_specs=[gamma_spec, tile_spec, tile_spec],
            out_specs=tile_spec,
            compiler_params=cparams,
        )(gamma2, raw2, new2)

    return out2.reshape(orig_shape)


# ------------------------------- main -------------------------------------- #

if __name__ == "__main__":
    key = jax.random.PRNGKey(0)
    k1, k2, k3 = jax.random.split(key, 3)

    seq, batch, model_dim = 8, 2, 32
    init_value = 0.1

    raw_inputs = jax.random.normal(k1, (seq, batch, model_dim), dtype=jnp.float32)
    new_inputs = jax.random.normal(k2, (seq, batch, model_dim), dtype=jnp.float32)
    gamma = init_value * jnp.ones((model_dim,), dtype=jnp.float32)  # nn.Parameter init

    # --- eval mode (dropout is identity): must match reference exactly ---
    out_eval = layer_scale_block(raw_inputs, new_inputs, gamma,
                                 dropout_p=0.1, training=False)
    out_eval = jax.block_until_ready(out_eval)
    ref_eval = raw_inputs + gamma * new_inputs
    assert out_eval.shape == raw_inputs.shape
    assert jnp.allclose(out_eval, ref_eval, atol=1e-6, rtol=1e-6), "eval mismatch"

    # --- training mode: compare against a JAX reference using the same keep mask ---
    p = 0.5
    keep = jax.random.bernoulli(k3, 1.0 - p, raw_inputs.shape).astype(jnp.float32)
    out_train = layer_scale_block(raw_inputs, new_inputs, gamma,
                                  dropout_p=p, training=True, keep_mask=keep)
    out_train = jax.block_until_ready(out_train)
    ref_train = raw_inputs + keep * ((gamma / (1.0 - p)) * new_inputs)
    assert jnp.allclose(out_train, ref_train, atol=1e-5, rtol=1e-5), "train mismatch"

    print("KERNEL_OK")
</pallas_src>

<mosaic_0001>
module attributes {stable_mosaic.version = 11 : i64} {
  func.func @_eval_kernel(%arg0: i32, %arg1: memref<1x128xf32, #tpu.memory_space<vmem>>, %arg2: memref<4x128xf32, #tpu.memory_space<vmem>>, %arg3: memref<4x128xf32, #tpu.memory_space<vmem>>, %arg4: memref<4x128xf32, #tpu.memory_space<vmem>>) attributes {dimension_semantics = [#tpu.dimension_semantics<parallel>], iteration_bounds = array<i64: 1>, scalar_prefetch = 0 : i64, scratch_operands = 0 : i64, tpu.core_type = #tpu.core_type<tc>, window_params = [{pipeline_mode = #tpu.pipeline_mode<synchronous>, transform_indices = @transform_0, window_bounds = array<i64: 1, 128>}, {transform_indices = @transform_1, window_bounds = array<i64: 4, 128>}, {transform_indices = @transform_2, window_bounds = array<i64: 4, 128>}, {transform_indices = @transform_3, window_bounds = array<i64: 4, 128>}]} {
    %c0 = arith.constant 0 : index
    %c0_0 = arith.constant 0 : index
    %0 = vector.load %arg2[%c0, %c0_0] : memref<4x128xf32, #tpu.memory_space<vmem>>, vector<4x128xf32>
    %c0_1 = arith.constant 0 : index
    %c0_2 = arith.constant 0 : index
    %1 = vector.load %arg1[%c0_1, %c0_2] : memref<1x128xf32, #tpu.memory_space<vmem>>, vector<1x128xf32>
    %c0_3 = arith.constant 0 : index
    %c0_4 = arith.constant 0 : index
    %2 = vector.load %arg3[%c0_3, %c0_4] : memref<4x128xf32, #tpu.memory_space<vmem>>, vector<4x128xf32>
    %3 = vector.broadcast %1 : vector<1x128xf32> to vector<4x128xf32>
    %4 = arith.mulf %3, %2 : vector<4x128xf32>
    %5 = arith.addf %0, %4 : vector<4x128xf32>
    %c0_5 = arith.constant 0 : index
    %c0_6 = arith.constant 0 : index
    %6 = vector.load %arg4[%c0_5, %c0_6] : memref<4x128xf32, #tpu.memory_space<vmem>>, vector<4x128xf32>
    tpu.vector_store %arg4[%c0_5, %c0_6], %5 {strides = array<i32>} : memref<4x128xf32, #tpu.memory_space<vmem>>, vector<4x128xf32>,
    return
  }
  func.func @transform_0(%arg0: i32) -> (i32, i32) {
    %c0_i32 = arith.constant 0 : i32
    %c0_i32_0 = arith.constant 0 : i32
    %c0_i32_1 = arith.constant 0 : i32
    return %c0_i32, %c0_i32_0 : i32, i32
  }
  func.func @transform_1(%arg0: i32) -> (i32, i32) {
    %c0_i32 = arith.constant 0 : i32
    %c0_i32_0 = arith.constant 0 : i32
    return %arg0, %c0_i32 : i32, i32
  }
  func.func @transform_2(%arg0: i32) -> (i32, i32) {
    %c0_i32 = arith.constant 0 : i32
    %c0_i32_0 = arith.constant 0 : i32
    return %arg0, %c0_i32 : i32, i32
  }
  func.func @transform_3(%arg0: i32) -> (i32, i32) {
    %c0_i32 = arith.constant 0 : i32
    %c0_i32_0 = arith.constant 0 : i32
    return %arg0, %c0_i32 : i32, i32
  }
}

</mosaic_0001>

<bundles_post_ra>
// kernel: tpu_custom_call.1
= control target key start
LH: loop header
LB: loop body
LE: loop exit
PB: predicated region body
PF: predicated region fallthrough
CT: control target
= control target key end

     0   :  { %8 = vsyncpa [#allocation3], 0  ;;  %s205_s0 = inlined_call_operand.hbm [shape: f32[1,128], index: 0, kind: input, shape index: {}]   ;;  %s206_s1 = inlined_call_operand.hbm [shape: f32[4,128], index: 1, kind: input, shape index: {}]   ;;  %s207_s2 = inlined_call_operand.vmem [shape: f32[4,128], index: 2, kind: input, shape index: {}]   ;;  %s208_s3 = inlined_call_operand.hbm [shape: f32[4,128], index: 3, kind: output, shape index: {}]  }
   0x1   :  { %9 = vsyncpa [#allocation6], 0 }
   0x2   :  { %10 = vsyncpa [#allocation4], 0  ;;  %s143_s12 = smov [#allocation2]   ;;  %s144_s14 = smov [#allocation5]  }
   0x3   :  { %s17_s13 = sshll.u32 %s143_s12, 4  ;;  %s27_s15 = sshll.u32 %s144_s14, 4  ;;  %s18_s13 = int_to_ptr.vmem [resolvable:$true] %s17_s13  ;;  %s28_s15 = int_to_ptr.vmem [resolvable:$true] %s27_s15 }
   0x4   :  { %s71_s18 = scalar_lea.hbm %s205_s0, 16 }
   0x5   :  { %p72_p0 = scmp.ne.s32.totalorder %s205_s0, %s71_s18  ;;  %p75_p1 = scmp.lt.u32.totalorder %s71_s18, %s205_s0 }
   0x7   :  { %p77_p2 = pnand %p75_p1, %p72_p0 }
   0x9   :  { %80 = shalt.err (!%p77_p2)
}
   0xa   :  { %s81_s23 = scalar_lea.vmem %s18_s13, 16  ;;  %s85_s24 = scalar_lea.vmem %s18_s13, 32 }
   0xb   :  { %p82_p3 = scmp.ne.s32.totalorder %s18_s13, %s81_s23  ;;  %p86_p4 = scmp.lt.s32.totalorder %s18_s13, %s18_s13 }
   0xc   :  { %p87_p5 = scmp.lt.s32.totalorder %s85_s24, %s81_s23 }
   0xe   :  { %p88_p6 = por %p87_p5, %p86_p4 }
  0x10   :  { %p89_p7 = pnand %p88_p6, %p82_p3 }
  0x12   :  { %92 = shalt.err (!%p89_p7)
}
  0x13   :  { %20 = dma.hbm_to_vmem [thread:$0]  %s205_s0, 16, %s18_s13, [#allocation3]  }
  0x14   :  { %s93_s29 = scalar_lea.hbm %s206_s1, 64 }
  0x15   :  { %p94_p8 = scmp.ne.s32.totalorder %s206_s1, %s93_s29  ;;  %p97_p9 = scmp.lt.u32.totalorder %s93_s29, %s206_s1 }
  0x17   :  { %p99_p10 = pnand %p97_p9, %p94_p8 }
  0x19   :  { %102 = shalt.err (!%p99_p10)
}
  0x1a   :  { %s103_s7 = scalar_lea.vmem %s28_s15, 64  ;;  %p108_p12 = scmp.lt.s32.totalorder %s28_s15, %s28_s15 }
  0x1b   :  { %p104_p11 = scmp.ne.s32.totalorder %s28_s15, %s103_s7  ;;  %p109_p13 = scmp.lt.s32.totalorder %s103_s7, %s103_s7 }
  0x1d   :  { %p110_p0 = por %p109_p13, %p108_p12 }
  0x1f   :  { %p111_p1 = pnand %p110_p0, %p104_p11 }
  0x21   :  { %114 = shalt.err (!%p111_p1)
}
  0x22   :  { %30 = dma.hbm_to_vmem [thread:$0]  %s206_s1, 64, %s28_s15, [#allocation6]  }
  0x23   :  { %137 = dma.done.wait [#allocation3], 16  }
  0x24   :  { %138 = vsyncadd [#allocation3], 4294967280 }
  0x25   :  { %139 = dma.done.wait [#allocation6], 64  }
  0x26   :  { %140 = vsyncadd [#allocation6], 4294967232  ;;  %s145_s9 = smov [#allocation7]   ;;  %v39_v0 = vld [vmem:[#allocation5] sm:$0xf] }
  0x27   :  { %s57_s10 = sshll.u32 %s145_s9, 4  ;;  %v67_v1 = vld [vmem:[#allocation2] ss:$0 sm:$0xff]  ;;  %v41_v2 = vld [vmem:[%s207_s2] sm:$0xf]  ;;  %s58_s10 = int_to_ptr.vmem [resolvable:$true] %s57_s10 }
  0x28   :  { %v48_v3 = vmul.f32 %v67_v1, %v41_v2  ;;  %s115_s13 = scalar_lea.vmem %s58_s10, 64  ;;  %p120_p3 = scmp.lt.s32.totalorder %s58_s10, %s58_s10 }
  0x29   :  { %p116_p2 = scmp.ne.s32.totalorder %s58_s10, %s115_s13  ;;  %p121_p4 = scmp.lt.s32.totalorder %s115_s13, %s115_s13 }
  0x2a   :  { %v49_v4 = vadd.f32 %v48_v3, %v39_v0 }
  0x2b   :  { %p122_p5 = por %p121_p4, %p120_p3 }
  0x2c   :  { %50 = vst [vmem:[#allocation7] sm:$0xf] %v49_v4 }
  0x2d   :  { %p123_p6 = pnand %p122_p5, %p116_p2 }
  0x2f   :  { %126 = shalt.err (!%p123_p6)
}
  0x30   :  { %s127_s15 = scalar_lea.hbm %s208_s3, 64 }
  0x31   :  { %p128_p7 = scmp.ne.s32.totalorder %s208_s3, %s127_s15  ;;  %p131_p8 = scmp.lt.u32.totalorder %s127_s15, %s208_s3 }
  0x33   :  { %p133_p9 = pnand %p131_p8, %p128_p7 }
  0x35   :  { %136 = shalt.err (!%p133_p9)
}
  0x36   :  { %60 = dma.vmem_to_hbm [thread:$0]  %s58_s10, 64, %s208_s3, [#allocation4]  }
  0x37   :  { %141 = dma.done.wait [#allocation4], 64  }
  0x38   :  { %142 = vsyncadd [#allocation4], 4294967232 }
  0x39   :  { %64 = vsyncpa [#allocation3], 1 }
  0x3a   :  { %65 = vsyncpa [#allocation6], 1 }
  0x3b   :  { %66 = vsyncpa [#allocation4], 1 }

</bundles_post_ra>
